<compile_context>
chip_gen: v5e
topology: v5e:2x2
jax: 0.10.0
libtpu: 0.0.40
codegen_flags: <defaults>
</compile_context>

<pallas_src>
import jax
import jax.numpy as jnp
from jax.experimental import pallas as pl
from jax.experimental.pallas import tpu as pltpu

# ------------------------- model hyper-parameters -----------------------------
RHETORICAL_ROLE = 8          # R: number of rhetorical-role classes
NUM_PROTOS_PER_CLASS = 8     # P: prototypes per class (multiple of 8 -> sublane aligned)
EMBEDDING_WIDTH = 32         # E: embedding width
NORM_EPS = 1e-12             # F.normalize eps


# ------------------------------ fused compute ----------------------------------
def _proto_sim_compute(protos, emb, w, b):
    """protos (P,E), emb (N,E), w (R,E), b (1,R) -> (min_dist (N,1), pred (N,R))."""
    # F.normalize(p=2, dim=-1): x / max(||x||, eps)  ==  x * rsqrt(max(sumsq, eps^2))
    p_inv = jax.lax.rsqrt(jnp.maximum(
        jnp.sum(protos * protos, axis=-1, keepdims=True), NORM_EPS * NORM_EPS))
    protos_n = protos * p_inv                                        # (P, E)
    e_inv = jax.lax.rsqrt(jnp.maximum(
        jnp.sum(emb * emb, axis=-1, keepdims=True), NORM_EPS * NORM_EPS))
    emb_n = emb * e_inv                                              # (N, E)

    # Classifier folded through the prototypes (independent of sim -> overlaps it):
    # proto_logits[p, r] = protos_n[p] . W[r] + b[r]
    proto_logits = jax.lax.dot_general(
        protos_n, w, (((1,), (1,)), ((), ())),
        preferred_element_type=jnp.float32) + b                      # (P, R)

    # Raw similarities on the MXU.
    sim = jax.lax.dot_general(
        emb_n, protos_n, (((1,), (1,)), ((), ())),
        preferred_element_type=jnp.float32)                          # (N, P)

    # dist = 1/(1+exp(s)/10) is strictly decreasing in s, so
    # max(dist) == f(min(sim)) and argmax(dist) == argmin(sim) (first index).
    min_sim = jnp.min(sim, axis=-1, keepdims=True)                   # (N, 1)
    n, p = sim.shape
    col = jax.lax.broadcasted_iota(jnp.int32, (n, p), 1)
    idx = jnp.min(jnp.where(sim == min_sim, col, p),
                  axis=-1, keepdims=True)                            # (N, 1) int32

    # exp / reciprocal only on the reduced (N,1) values.
    min_dist = 1.0 / (1.0 + jnp.exp(min_sim) / 10.0)                 # (N, 1)

    # pred = onehot @ proto_logits  ==  nearest_proto @ W.T + b
    onehot = (col == idx).astype(jnp.float32)                        # (N, P)
    pred = jnp.dot(onehot, proto_logits,
                   preferred_element_type=jnp.float32)               # (N, R)
    return min_dist, pred


def _proto_sim_kernel(role_id_ref,    # SMEM (1,) int32 (scalar prefetch -> proto index_map)
                      protos_ref,     # VMEM (P, E)  prototypes of the selected class
                      emb_ref,        # VMEM (TN, E) role-embedding tile
                      w_ref,          # VMEM (R, E)  classification weight (untransposed)
                      b_ref,          # VMEM (1, R)  classification bias
                      min_dist_ref,   # VMEM (TN, 1)
                      pred_ref):      # VMEM (TN, R)
    del role_id_ref  # consumed only by the prototype BlockSpec index_map
    min_dist, pred = _proto_sim_compute(protos_ref[...], emb_ref[...],
                                        w_ref[...], b_ref[...])
    min_dist_ref[...] = min_dist
    pred_ref[...] = pred


def _proto_sim_kernel_batched(role_ids_ref,  # SMEM (G,) int32
                              protos_ref,    # VMEM (P, E)   per-step selected class
                              emb_ref,       # VMEM (1, N, E)
                              w_ref,         # VMEM (R, E)
                              b_ref,         # VMEM (1, R)
                              min_dist_ref,  # VMEM (1, N, 1)
                              pred_ref):     # VMEM (1, N, R)
    del role_ids_ref
    min_dist, pred = _proto_sim_compute(protos_ref[...], emb_ref[0],
                                        w_ref[...], b_ref[...])
    min_dist_ref[0] = min_dist
    pred_ref[0] = pred


# ------------------------------ wrappers ---------------------------------------
def proto_sim_forward(params, role_embedding, role_id, *, tile_n=256):
    """Mirrors ProtoSimModel.forward -> (min_dist (N,), predict_role (N, R))."""
    protos_w = params["prototypes"]                    # (R*P, E)
    w_cls = params["cls_w"]                            # (R, E)  torch Linear weight, untransposed
    b_cls = params["cls_b"]                            # (1, R)  pre-reshaped once at init

    n, e = role_embedding.shape
    r = w_cls.shape[0]
    p = NUM_PROTOS_PER_CLASS
    assert protos_w.shape == (r * p, e)

    emb = role_embedding.astype(jnp.float32)
    if n <= tile_n:
        tn, num_tiles, n_pad = n, 1, n
    else:
        tn = tile_n
        num_tiles = pl.cdiv(n, tn)
        n_pad = num_tiles * tn
        if n_pad != n:                                 # zero rows are harmless (sliced off)
            emb = jnp.pad(emb, ((0, n_pad - n), (0, 0)))

    role_id_arr = jnp.asarray(role_id, dtype=jnp.int32).reshape(1)

    grid_spec = pltpu.PrefetchScalarGridSpec(
        num_scalar_prefetch=1,
        grid=(num_tiles,),
        in_specs=[
            # role_id (SMEM) selects which P-row block of the prototype table is DMA'd;
            # constant block index across steps -> fetched once.
            pl.BlockSpec((p, e), lambda i, rid: (rid[0], 0)),
            pl.BlockSpec((tn, e), lambda i, rid: (i, 0)),
            pl.BlockSpec((r, e), lambda i, rid: (0, 0)),
            pl.BlockSpec((1, r), lambda i, rid: (0, 0)),
        ],
        out_specs=[
            pl.BlockSpec((tn, 1), lambda i, rid: (i, 0)),
            pl.BlockSpec((tn, r), lambda i, rid: (i, 0)),
        ],
    )

    min_dist, pred = pl.pallas_call(
        _proto_sim_kernel,
        out_shape=(jax.ShapeDtypeStruct((n_pad, 1), jnp.float32),
                   jax.ShapeDtypeStruct((n_pad, r), jnp.float32)),
        grid_spec=grid_spec,
        compiler_params=pltpu.CompilerParams(
            dimension_semantics=("parallel",)),   # shards N-tiles over v7x's 2 TCs
    )(role_id_arr, protos_w, emb, w_cls, b_cls)

    return min_dist[:n, 0], pred[:n]


def proto_sim_forward_many(params, role_embeddings, role_ids):
    """G independent forward() calls fused into one pallas_call.

    role_embeddings: (G, N, E); role_ids: (G,) int32.
    Returns (min_dist (G, N), predict_role (G, N, R))."""
    protos_w = params["prototypes"]
    w_cls = params["cls_w"]
    b_cls = params["cls_b"]

    g, n, e = role_embeddings.shape
    r = w_cls.shape[0]
    p = NUM_PROTOS_PER_CLASS

    role_ids = jnp.asarray(role_ids, dtype=jnp.int32)

    grid_spec = pltpu.PrefetchScalarGridSpec(
        num_scalar_prefetch=1,
        grid=(g,),
        in_specs=[
            pl.BlockSpec((p, e), lambda i, rid: (rid[i], 0)),   # per-group prototype slice
            pl.BlockSpec((1, n, e), lambda i, rid: (i, 0, 0)),
            pl.BlockSpec((r, e), lambda i, rid: (0, 0)),
            pl.BlockSpec((1, r), lambda i, rid: (0, 0)),
        ],
        out_specs=[
            pl.BlockSpec((1, n, 1), lambda i, rid: (i, 0, 0)),
            pl.BlockSpec((1, n, r), lambda i, rid: (i, 0, 0)),
        ],
    )

    min_dist, pred = pl.pallas_call(
        _proto_sim_kernel_batched,
        out_shape=(jax.ShapeDtypeStruct((g, n, 1), jnp.float32),
                   jax.ShapeDtypeStruct((g, n, r), jnp.float32)),
        grid_spec=grid_spec,
        compiler_params=pltpu.CompilerParams(
            dimension_semantics=("parallel",)),   # independent groups -> megacore on v7x
    )(role_ids, protos_w, role_embeddings.astype(jnp.float32), w_cls, b_cls)

    return min_dist[..., 0], pred


# --------------------------- pure-JAX reference -------------------------------
def _normalized_protos(params, role_id):
    p = NUM_PROTOS_PER_CLASS
    protos = jax.lax.dynamic_slice_in_dim(params["prototypes"], role_id * p, p, 0)
    return protos / jnp.maximum(
        jnp.linalg.norm(protos, axis=-1, keepdims=True), NORM_EPS)


def proto_sim_reference(params, role_embedding, role_id):
    protos = _normalized_protos(params, role_id)
    emb = role_embedding / jnp.maximum(
        jnp.linalg.norm(role_embedding, axis=-1, keepdims=True), NORM_EPS)
    sim = jnp.exp(emb @ protos.T) / 10.0
    dist = 1.0 / (1.0 + sim)
    min_dist = jnp.max(dist, axis=1)
    nearest = protos[jnp.argmax(dist, axis=1)]
    pred = nearest @ params["cls_w"].T + params["cls_b"]     # cls_b is (1, R) -> broadcasts
    return min_dist, pred


# ----------------------------------- main --------------------------------------
if __name__ == "__main__":
    key = jax.random.PRNGKey(0)
    k1, k2, k3, k4, k5 = jax.random.split(key, 5)

    total_protos = RHETORICAL_ROLE * NUM_PROTOS_PER_CLASS
    params = {
        "prototypes": jax.random.normal(
            k1, (total_protos, EMBEDDING_WIDTH), dtype=jnp.float32),
        "cls_w": 0.1 * jax.random.normal(
            k2, (RHETORICAL_ROLE, EMBEDDING_WIDTH), dtype=jnp.float32),
        # bias pre-reshaped ONCE at init (no per-call reshape).
        "cls_b": 0.01 * jax.random.normal(
            k3, (1, RHETORICAL_ROLE), dtype=jnp.float32),
    }

    batch = 16
    role_embedding = jax.random.normal(
        k4, (batch, EMBEDDING_WIDTH), dtype=jnp.float32)
    role_id = 3

    # ---- single forward() ----
    min_dist, pred = proto_sim_forward(params, role_embedding, role_id)
    min_dist, pred = jax.block_until_ready((min_dist, pred))

    assert min_dist.shape == (batch,)
    assert pred.shape == (batch, RHETORICAL_ROLE)
    assert bool(jnp.all(jnp.isfinite(min_dist))) and bool(jnp.all(jnp.isfinite(pred)))

    ref_min_dist, _ = proto_sim_reference(params, role_embedding, role_id)
    # min_dist (a row-wise max) is tie-break agnostic -> robust correctness check.
    assert jnp.allclose(min_dist, ref_min_dist, atol=1e-3, rtol=1e-3)

    # Tie-robust check on pred: every row must equal one of the P candidate
    # prototype logits (nearest_proto @ W.T + b) of the selected class.
    cand = _normalized_protos(params, role_id) @ params["cls_w"].T + params["cls_b"]
    row_err = jnp.min(jnp.max(jnp.abs(pred[:, None, :] - cand[None, :, :]), axis=-1), axis=-1)
    assert bool(jnp.all(row_err < 5e-3))

    # ---- batched variant: 4 independent forward() calls in one pallas_call ----
    groups = 4
    role_ids = jnp.array([0, 2, 5, 7], dtype=jnp.int32)
    embs = jax.random.normal(
        k5, (groups, batch, EMBEDDING_WIDTH), dtype=jnp.float32)
    md_b, pred_b = proto_sim_forward_many(params, embs, role_ids)
    md_b, pred_b = jax.block_until_ready((md_b, pred_b))
    assert md_b.shape == (groups, batch)
    assert pred_b.shape == (groups, batch, RHETORICAL_ROLE)
    for gi in range(groups):
        ref_md_g, _ = proto_sim_reference(params, embs[gi], int(role_ids[gi]))
        assert jnp.allclose(md_b[gi], ref_md_g, atol=1e-3, rtol=1e-3)

    print("KERNEL_OK")
</pallas_src>

<mosaic_0001>
module attributes {stable_mosaic.version = 11 : i64} {
  func.func @_proto_sim_kernel(%arg0: i32, %arg1: memref<1xi32, #tpu.memory_space<smem>>, %arg2: memref<8x32xf32, #tpu.memory_space<vmem>>, %arg3: memref<16x32xf32, #tpu.memory_space<vmem>>, %arg4: memref<8x32xf32, #tpu.memory_space<vmem>>, %arg5: memref<1x8xf32, #tpu.memory_space<vmem>>, %arg6: memref<16x1xf32, #tpu.memory_space<vmem>>, %arg7: memref<16x8xf32, #tpu.memory_space<vmem>>) attributes {dimension_semantics = [#tpu.dimension_semantics<parallel>], iteration_bounds = array<i64: 1>, scalar_prefetch = 1 : i64, scratch_operands = 0 : i64, tpu.core_type = #tpu.core_type<tc>, window_params = [{transform_indices = @transform_0, window_bounds = array<i64: 8, 32>}, {transform_indices = @transform_1, window_bounds = array<i64: 16, 32>}, {pipeline_mode = #tpu.pipeline_mode<synchronous>, transform_indices = @transform_2, window_bounds = array<i64: 8, 32>}, {pipeline_mode = #tpu.pipeline_mode<synchronous>, transform_indices = @transform_3, window_bounds = array<i64: 1, 8>}, {transform_indices = @transform_4, window_bounds = array<i64: 16, 1>}, {transform_indices = @transform_5, window_bounds = array<i64: 16, 8>}]} {
    %c0 = arith.constant 0 : index
    %c0_0 = arith.constant 0 : index
    %0 = vector.load %arg2[%c0, %c0_0] : memref<8x32xf32, #tpu.memory_space<vmem>>, vector<8x32xf32>
    %c0_1 = arith.constant 0 : index
    %c0_2 = arith.constant 0 : index
    %1 = vector.load %arg3[%c0_1, %c0_2] : memref<16x32xf32, #tpu.memory_space<vmem>>, vector<16x32xf32>
    %c0_3 = arith.constant 0 : index
    %c0_4 = arith.constant 0 : index
    %2 = vector.load %arg4[%c0_3, %c0_4] : memref<8x32xf32, #tpu.memory_space<vmem>>, vector<8x32xf32>
    %c0_5 = arith.constant 0 : index
    %c0_6 = arith.constant 0 : index
    %3 = vector.load %arg5[%c0_5, %c0_6] : memref<1x8xf32, #tpu.memory_space<vmem>>, vector<1x8xf32>
    %4 = arith.mulf %0, %0 : vector<8x32xf32>
    %cst = arith.constant dense<0.000000e+00> : vector<8xf32>
    %5 = vector.multi_reduction <add>, %4, %cst [1] : vector<8x32xf32> to vector<8xf32>
    %6 = vector.shape_cast %5 : vector<8xf32> to vector<8x1xf32>
    %cst_7 = arith.constant 1.000000e-24 : f32
    %7 = vector.broadcast %cst_7 : f32 to vector<8x1xf32>
    %8 = arith.maximumf %6, %7 : vector<8x1xf32>
    %9 = math.rsqrt %8 : vector<8x1xf32>
    %10 = vector.broadcast %9 : vector<8x1xf32> to vector<8x32xf32>
    %11 = arith.mulf %0, %10 : vector<8x32xf32>
    %12 = arith.mulf %1, %1 : vector<16x32xf32>
    %cst_8 = arith.constant dense<0.000000e+00> : vector<16xf32>
    %13 = vector.multi_reduction <add>, %12, %cst_8 [1] : vector<16x32xf32> to vector<16xf32>
    %14 = vector.shape_cast %13 : vector<16xf32> to vector<16x1xf32>
    %cst_9 = arith.constant 1.000000e-24 : f32
    %15 = vector.broadcast %cst_9 : f32 to vector<16x1xf32>
    %16 = arith.maximumf %14, %15 : vector<16x1xf32>
    %17 = math.rsqrt %16 : vector<16x1xf32>
    %18 = vector.broadcast %17 : vector<16x1xf32> to vector<16x32xf32>
    %19 = arith.mulf %1, %18 : vector<16x32xf32>
    %cst_10 = arith.constant dense<0.000000e+00> : vector<8x8xf32>
    %20 = tpu.matmul %11, %2, %cst_10 {dimension_numbers = #tpu.dot_dimension_numbers<[1], [1], [0], [0], [0, 0, 1, 0], [], []>} : vector<8x32xf32>, vector<8x32xf32>, vector<8x8xf32> -> vector<8x8xf32>
    %21 = vector.broadcast %3 : vector<1x8xf32> to vector<8x8xf32>
    %22 = arith.addf %20, %21 : vector<8x8xf32>
    %cst_11 = arith.constant dense<0.000000e+00> : vector<16x8xf32>
    %23 = tpu.matmul %19, %11, %cst_11 {dimension_numbers = #tpu.dot_dimension_numbers<[1], [1], [0], [0], [0, 0, 1, 0], [], []>} : vector<16x32xf32>, vector<8x32xf32>, vector<16x8xf32> -> vector<16x8xf32>
    %cst_12 = arith.constant dense<0x7F800000> : vector<16xf32>
    %24 = vector.multi_reduction <minimumf>, %23, %cst_12 [1] : vector<16x8xf32> to vector<16xf32>
    %25 = vector.shape_cast %24 : vector<16xf32> to vector<16x1xf32>
    %26 = tpu.iota {dimensions = array<i32: 1>} : vector<16x8xi32>
    %27 = vector.broadcast %25 : vector<16x1xf32> to vector<16x8xf32>
    %28 = arith.cmpf oeq, %23, %27 : vector<16x8xf32>
    %c8_i32 = arith.constant 8 : i32
    %29 = vector.broadcast %c8_i32 : i32 to vector<16x8xi32>
    %30 = arith.select %28, %26, %29 : vector<16x8xi1>, vector<16x8xi32>
    %cst_13 = arith.constant dense<2147483647> : vector<16xi32>
    %31 = vector.multi_reduction <minsi>, %30, %cst_13 [1] : vector<16x8xi32> to vector<16xi32>
    %32 = vector.shape_cast %31 : vector<16xi32> to vector<16x1xi32>
    %33 = math.exp %25 : vector<16x1xf32>
    %cst_14 = arith.constant 1.000000e+01 : f32
    %34 = vector.broadcast %cst_14 : f32 to vector<16x1xf32>
    %35 = arith.divf %33, %34 : vector<16x1xf32>
    %cst_15 = arith.constant 1.000000e+00 : f32
    %36 = vector.broadcast %cst_15 : f32 to vector<16x1xf32>
    %37 = arith.addf %36, %35 : vector<16x1xf32>
    %cst_16 = arith.constant 1.000000e+00 : f32
    %38 = vector.broadcast %cst_16 : f32 to vector<16x1xf32>
    %39 = arith.divf %38, %37 : vector<16x1xf32>
    %40 = vector.broadcast %32 : vector<16x1xi32> to vector<16x8xi32>
    %41 = arith.cmpi eq, %26, %40 : vector<16x8xi32>
    %42 = arith.extui %41 : vector<16x8xi1> to vector<16x8xi32>
    %43 = arith.sitofp %42 : vector<16x8xi32> to vector<16x8xf32>
    %cst_17 = arith.constant dense<0.000000e+00> : vector<16x8xf32>
    %44 = tpu.matmul %43, %22, %cst_17 {dimension_numbers = #tpu.dot_dimension_numbers<[1], [0], [0], [1], [0, 0, 1, 1], [], []>} : vector<16x8xf32>, vector<8x8xf32>, vector<16x8xf32> -> vector<16x8xf32>
    %c0_18 = arith.constant 0 : index
    %c0_19 = arith.constant 0 : index
    %45 = vector.load %arg6[%c0_18, %c0_19] : memref<16x1xf32, #tpu.memory_space<vmem>>, vector<16x1xf32>
    tpu.vector_store %arg6[%c0_18, %c0_19], %39 {strides = array<i32>} : memref<16x1xf32, #tpu.memory_space<vmem>>, vector<16x1xf32>,
    %c0_20 = arith.constant 0 : index
    %c0_21 = arith.constant 0 : index
    %46 = vector.load %arg7[%c0_20, %c0_21] : memref<16x8xf32, #tpu.memory_space<vmem>>, vector<16x8xf32>
    tpu.vector_store %arg7[%c0_20, %c0_21], %44 {strides = array<i32>} : memref<16x8xf32, #tpu.memory_space<vmem>>, vector<16x8xf32>,
    return
  }
  func.func @transform_0(%arg0: i32, %arg1: memref<1xi32, #tpu.memory_space<smem>>) -> (i32, i32) {
    %c0 = arith.constant 0 : index
    %0 = memref.load %arg1[%c0] : memref<1xi32, #tpu.memory_space<smem>>
    %c0_i32 = arith.constant 0 : i32
    %c0_i32_0 = arith.constant 0 : i32
    return %0, %c0_i32 : i32, i32
  }
  func.func @transform_1(%arg0: i32, %arg1: memref<1xi32, #tpu.memory_space<smem>>) -> (i32, i32) {
    %c0_i32 = arith.constant 0 : i32
    %c0_i32_0 = arith.constant 0 : i32
    return %arg0, %c0_i32 : i32, i32
  }
  func.func @transform_2(%arg0: i32, %arg1: memref<1xi32, #tpu.memory_space<smem>>) -> (i32, i32) {
    %c0_i32 = arith.constant 0 : i32
    %c0_i32_0 = arith.constant 0 : i32
    %c0_i32_1 = arith.constant 0 : i32
    return %c0_i32, %c0_i32_0 : i32, i32
  }
  func.func @transform_3(%arg0: i32, %arg1: memref<1xi32, #tpu.memory_space<smem>>) -> (i32, i32) {
    %c0_i32 = arith.constant 0 : i32
    %c0_i32_0 = arith.constant 0 : i32
    %c0_i32_1 = arith.constant 0 : i32
    return %c0_i32, %c0_i32_0 : i32, i32
  }
  func.func @transform_4(%arg0: i32, %arg1: memref<1xi32, #tpu.memory_space<smem>>) -> (i32, i32) {
    %c0_i32 = arith.constant 0 : i32
    %c0_i32_0 = arith.constant 0 : i32
    return %arg0, %c0_i32 : i32, i32
  }
  func.func @transform_5(%arg0: i32, %arg1: memref<1xi32, #tpu.memory_space<smem>>) -> (i32, i32) {
    %c0_i32 = arith.constant 0 : i32
    %c0_i32_0 = arith.constant 0 : i32
    return %arg0, %c0_i32 : i32, i32
  }
}

</mosaic_0001>

<bundles_post_ra>
// kernel: tpu_custom_call.1
= control target key start
LH: loop header
LB: loop body
LE: loop exit
PB: predicated region body
PF: predicated region fallthrough
CT: control target
= control target key end

     0   :  { %vm44_vm0 = vcmask 261120   ;;  %vm150_vm10 = vcmask 64512   ;;  %v322_v48 = vmov 10.0   ;;  %v157_v51 = vlaneseq  ;;  %s423_s2 = inlined_call_operand.vmem [shape: f32[16,32], index: 2, kind: input, shape index: {}]   ;;  %s424_s0 = inlined_call_operand.<no memory space> [shape: s32[1], index: 0, kind: input, shape index: {}]   ;;  %s425_s1 = inlined_call_operand.vmem [shape: f32[64,32], index: 1, kind: input, shape index: {}]   ;;  %s426_s3 = inlined_call_operand.vmem [shape: f32[8,32], index: 3, kind: input, shape index: {}]   ;;  %s427_s4 = inlined_call_operand.vmem [shape: f32[1,8], index: 4, kind: input, shape index: {}]   ;;  %s428_s5 = inlined_call_operand.vmem [shape: f32[16,1], index: 5, kind: output, shape index: {0}]   ;;  %s429_s6 = inlined_call_operand.vmem [shape: f32[16,8], index: 6, kind: output, shape index: {1}]  }
   0x1   :  { %v40_v0 = vld [vmem:[%s423_s2 + $0x8] sm:$0xff]  ;;  %p33_p0 = scmp.lt.s32.totalorder %s424_s0, 7  ;;  %v39_v5 = vld [vmem:[%s423_s2] sm:$0xff]  ;;  %vm273_vm15 = vcmask 7168  }
   0x2   :  { %v61_v1 = vmul.f32 %v40_v0, %v40_v0  ;;  %v60_v7 = vmul.f32 %v39_v5, %v39_v5  ;;  %v41_v9 = vld [vmem:[%s426_s3] sm:$0xff]  ;;  %v397_v53 = vand.u32 127, %v157_v51 }
   0x3   :  { %s433_s0 = smov (!%p33_p0, %s424_s0), 7  ;;  %293 = vmatpush.xpose.msk.msra.mxu0 %vm44_vm0, %v41_v9  ;;  %v305_v41 = vld [vmem:[%s427_s4] ss:$0 sm:$0xff] }
   0x4   :  { %v65_v2 = vsel %vm44_vm0, %v61_v1, 0.0  ;;  %s292_s27 = sshll.u32 %s433_s0, 3  ;;  %v62_v8 = vsel %vm44_vm0, %v60_v7, 0.0 }
   0x5   :  { %66 = vadd.xlane.f32.xlu1 %v65_v2  ;;  %s36_s30 = scalar_lea.vmem %s425_s1, %s292_s27 }
   0x6   :  { %v38_v3 = vld [vmem:[%s36_s30] sm:$0xff] }
   0x7   :  { %v43_v4 = vmul.f32 %v38_v3, %v38_v3 }
   0x9   :  { %v45_v6 = vsel %vm44_vm0, %v43_v4, 0.0 }
   0xa   :  { %46 = vadd.xlane.f32.xlu0 %v45_v6 }
  0x12   :  { %63 = vadd.xlane.f32.xlu0 %v62_v8 }
  0x78   :  { %v67_v10 = vpop.xlane.xlu1 %66 }
  0x79   :  { %v69_v11 = vmax.f32 %v67_v10, 1e-24 }
  0x7b   :  { %306 = vrsqrt.f32 %v69_v11  ;;  %vm86_vm1 = vweird.f32 %v69_v11 }
  0x7d   :  { %v47_v12 = vpop.xlane.xlu0 %46 }
  0x7e   :  { %v48_v13 = vmax.f32 %v47_v12, 1e-24 }
  0x80   :  { %308 = vrsqrt.f32 %v48_v13  ;;  %vm55_vm5 = vweird.f32 %v48_v13 }
  0x81   :  { %v307_v14 = vpop.eup %306 }
  0x82   :  { %v81_v15 = vmul.f32 %v307_v14, %v69_v11  ;;  %vm87_vm2 = vweird.f32 %v307_v14 }
  0x83   :  { %vm381_vm4 = vmor %vm86_vm1, %vm87_vm2 }
  0x84   :  { %v82_v16 = vmul.f32 %v307_v14, %v81_v15 }
  0x85   :  { %v64_v17 = vpop.xlane.xlu0 %63 }
  0x86   :  { %v309_v18 = vpop.eup %308  ;;  %v68_v19 = vmax.f32 %v64_v17, 1e-24  ;;  %v83_v20 = vmul.f32 0.5, %v82_v16 }
  0x87   :  { %v50_v21 = vmul.f32 %v309_v18, %v48_v13  ;;  %vm56_vm3 = vweird.f32 %v309_v18 }
  0x88   :  { %310 = vrsqrt.f32 %v68_v19  ;;  %v84_v23 = vsub.f32 1.5, %v83_v20  ;;  %vm57_vm6 = vmor %vm55_vm5, %vm56_vm3  ;;  %vm76_vm8 = vweird.f32 %v68_v19 }
  0x89   :  { %v51_v22 = vmul.f32 %v309_v18, %v50_v21  ;;  %312 = vrcp.f32 %v322_v48  ;;  %v323_v48 = vmov 0.0  }
  0x8a   :  { %v85_v30 = vmul.f32 %v307_v14, %v84_v23 }
  0x8b   :  { %v52_v24 = vmul.f32 0.5, %v51_v22 }
  0x8c   :  { %v89_v35 = vsel %vm381_vm4, %v307_v14, %v85_v30 }
  0x8d   :  { %v53_v25 = vsub.f32 1.5, %v52_v24  ;;  %v91_v37 = vmul.f32 %v89_v35, %v40_v0 }
  0x8e   :  { %v311_v26 = vpop.eup %310 }
  0x8f   :  { %v71_v28 = vmul.f32 %v311_v26, %v68_v19  ;;  %v54_v29 = vmul.f32 %v309_v18, %v53_v25  ;;  %vm77_vm7 = vweird.f32 %v311_v26  ;;  %v313_v49 = vpop.eup %312 }
  0x90   :  { %vm78_vm9 = vmor %vm76_vm8, %vm77_vm7  ;;  %v198_v50 = vmul.f32 10.0, %v313_v49  ;;  %vm202_vm13 = vweird.f32 %v313_v49 }
  0x91   :  { %v72_v31 = vmul.f32 %v311_v26, %v71_v28  ;;  %v58_v32 = vsel %vm57_vm6, %v309_v18, %v54_v29 }
  0x92   :  { %v59_v33 = vmul.f32 %v58_v32, %v38_v3  ;;  %v199_v52 = vsub.f32 1.0, %v198_v50 }
  0x93   :  { %v73_v34 = vmul.f32 0.5, %v72_v31 }
  0x94   :  { %294 = vmatmul.msk.f32.vlgmr.msra.gmra.mxu0 %vm44_vm0, %v59_v33  ;;  %295 = vmatpush.xpose.msk.msra.mxu1 %vm44_vm0, %v59_v33  ;;  %v200_v54 = vmul.f32 %v313_v49, %v199_v52 }
  0x95   :  { %v74_v36 = vsub.f32 1.5, %v73_v34  ;;  %302 = vmatpush.xpose.msk.msra.mxu3 %vm44_vm0, %v59_v33 }
  0x96   :  { %v201_v57 = vadd.f32 %v313_v49, %v200_v54 }
  0x97   :  { %v75_v38 = vmul.f32 %v311_v26, %v74_v36 }
  0x98   :  { %297 = vmatmul.msk.f32.vlgmr.msra.gmra.mxu3 %vm44_vm0, %v91_v37  ;;  %v203_v3 = vsel %vm202_vm13, %v313_v49, %v201_v57 }
  0x99   :  { %v79_v39 = vsel %vm78_vm9, %v311_v26, %v75_v38 }
  0x9a   :  { %v90_v40 = vmul.f32 %v79_v39, %v39_v5 }
  0x9c   :  { %296 = vmatmul.msk.f32.vlgmr.msra.gmra.mxu1 %vm44_vm0, %v90_v40 }
 0x111   :  { %v118_v42 = vpop.f32.mrf.mxu0 }
 0x112   :  { %v119_v43 = vadd.f32 %v305_v41, %v118_v42 }
 0x114   :  { %265 = vmatpush.msra.mxu2 %v119_v43 }
 0x119   :  { %v144_v44 = vpop.f32.mrf.mxu1 }
 0x11a   :  { %v151_v45 = vsel %vm150_vm10, %v144_v44, inf }
 0x11b   :  { %v147_v46 = vpop.f32.mrf.mxu3  ;;  %152 = vmin.xlane.f32.xlu1 %v151_v45 }
 0x11c   :  { %v154_v47 = vsel %vm150_vm10, %v147_v46, inf }
 0x11d   :  { %155 = vmin.xlane.f32.xlu2 %v154_v47 }
 0x18e   :  { %v153_v55 = vpop.xlane.xlu1 %152 }
 0x18f   :  { %vm159_vm11 = vcmp.eq.f32.partialorder %v144_v44, %v153_v55  ;;  %v193_v56 = vmul.f32 1.442695, %v153_v55 }
 0x190   :  { %v161_v58 = vsel %vm159_vm11, %v397_v53, 8  ;;  %v156_v59 = vpop.xlane.xlu2 %155 }
 0x191   :  { %314 = vpow2.f32 %v193_v56  ;;  %vm160_vm12 = vcmp.eq.f32.partialorder %v147_v46, %v156_v59  ;;  %v195_v60 = vmul.f32 1.442695, %v156_v59  ;;  %v163_v61 = vsel %vm150_vm10, %v161_v58, 2147483647 }
 0x192   :  { %v162_v62 = vsel %vm160_vm12, %v397_v53, 8  ;;  %v165_v63 = vshra.s32 %v163_v61, 16  ;;  %v164_v31 = vand.u32 65535, %v163_v61 }
 0x193   :  { %316 = vpow2.f32 %v195_v60  ;;  %v178_v0 = vsel %vm150_vm10, %v162_v62, 2147483647 }
 0x194   :  { %v167_v1 = vcvt.s32.f32 %v165_v63  ;;  %v180_v2 = vshra.s32 %v178_v0, 16  ;;  %v179_v32 = vand.u32 65535, %v178_v0  ;;  %v166_v34 = vcvt.s32.f32 %v164_v31 }
 0x196   :  { %168 = vmin.xlane.f32.xlu2 %v167_v1  ;;  %v182_v4 = vcvt.s32.f32 %v180_v2  ;;  %v181_v37 = vcvt.s32.f32 %v179_v32 }
 0x197   :  { %v315_v5 = vpop.eup %314 }
 0x198   :  { %v204_v6 = vmul.f32 %v315_v5, %v203_v3  ;;  %183 = vmin.xlane.f32.xlu0 %v182_v4 }
 0x199   :  { %v317_v7 = vpop.eup %316 }
 0x19a   :  { %v206_v8 = vadd.f32 1.0, %v204_v6  ;;  %v205_v9 = vmul.f32 %v317_v7, %v203_v3 }
 0x19c   :  { %318 = vrcp.f32 %v206_v8  ;;  %v207_v10 = vadd.f32 1.0, %v205_v9  ;;  %v219_v15 = vand.u32 2147483648, %v206_v8  ;;  %v217_v18 = vand.u32 2147483647, %v206_v8 }
 0x19d   :  { %vm213_vm0 = vweird.f32 %v206_v8 }
 0x19e   :  { %320 = vrcp.f32 %v207_v10  ;;  %v234_v21 = vand.u32 2147483648, %v207_v10  ;;  %v220_v22 = vor.u32 1.1754944e-38, %v219_v15  ;;  %v232_v24 = vand.u32 2147483647, %v207_v10 }
 0x19f   :  { %vm218_vm3 = vcmp.eq.f32.partialorder %v217_v18, 8.507059e+37  ;;  %vm228_vm4 = vweird.f32 %v207_v10 }
 0x1a0   :  { %v235_v28 = vor.u32 1.1754944e-38, %v234_v21  ;;  %vm233_vm6 = vcmp.eq.f32.partialorder %v232_v24, 8.507059e+37 }
 0x1a2   :  { %v319_v11 = vpop.eup %318 }
 0x1a3   :  { %v209_v12 = vmul.f32 %v319_v11, %v206_v8  ;;  %vm214_vm14 = vweird.f32 %v319_v11 }
 0x1a4   :  { %v321_v13 = vpop.eup %320  ;;  %vm215_vm1 = vmor %vm213_vm0, %vm214_vm14 }
 0x1a5   :  { %v210_v14 = vsub.f32 1.0, %v209_v12  ;;  %v224_v16 = vmul.f32 %v321_v13, %v207_v10  ;;  %vm229_vm2 = vweird.f32 %v321_v13 }
 0x1a6   :  { %vm230_vm5 = vmor %vm228_vm4, %vm229_vm2 }
 0x1a7   :  { %v211_v17 = vmul.f32 %v319_v11, %v210_v14  ;;  %v225_v19 = vsub.f32 1.0, %v224_v16 }
 0x1a9   :  { %v212_v20 = vadd.f32 %v319_v11, %v211_v17  ;;  %v226_v23 = vmul.f32 %v321_v13, %v225_v19 }
 0x1ab   :  { %v216_v25 = vsel %vm215_vm1, %v319_v11, %v212_v20  ;;  %v227_v27 = vadd.f32 %v321_v13, %v226_v23 }
 0x1ac   :  { %v221_v26 = vsel %vm218_vm3, %v220_v22, %v216_v25 }
 0x1ad   :  { %274 = vst.msk [vmem:[%s428_s5] sm:$0xff] %vm273_vm15, %v221_v26  ;;  %v231_v29 = vsel %vm230_vm5, %v321_v13, %v227_v27 }
 0x1ae   :  { %v236_v30 = vsel %vm233_vm6, %v235_v28, %v231_v29 }
 0x1af   :  { %275 = vst.msk [vmem:[%s428_s5 + $0x8] sm:$0xff] %vm273_vm15, %v236_v30 }
 0x209   :  { %v169_v33 = vpop.xlane.xlu2 %168 }
 0x20a   :  { %vm170_vm7 = vcmp.eq.f32.partialorder %v167_v1, %v169_v33  ;;  %v175_v39 = vcvt.f32.s32 %v169_v33 }
 0x20b   :  { %v184_v35 = vpop.xlane.xlu0 %183  ;;  %v171_v36 = vsel %vm170_vm7, %v166_v34, inf }
 0x20c   :  { %vm185_vm8 = vcmp.eq.f32.partialorder %v182_v4, %v184_v35  ;;  %172 = vmin.xlane.f32.xlu1 %v171_v36  ;;  %v176_v41 = vshll.u32 %v175_v39, 16  ;;  %v190_v42 = vcvt.f32.s32 %v184_v35 }
 0x20d   :  { %v186_v38 = vsel %vm185_vm8, %v181_v37, inf }
 0x20e   :  { %187 = vmin.xlane.f32.xlu2 %v186_v38  ;;  %v191_v47 = vshll.u32 %v190_v42, 16 }
 0x27f   :  { %v173_v40 = vpop.xlane.xlu1 %172 }
 0x280   :  { %v174_v43 = vcvt.f32.s32 %v173_v40 }
 0x281   :  { %v188_v44 = vpop.xlane.xlu2 %187 }
 0x282   :  { %v177_v45 = vadd.s32 %v176_v41, %v174_v43  ;;  %v189_v46 = vcvt.f32.s32 %v188_v44 }
 0x284   :  { %vm238_vm9 = vcmp.eq.s32.totalorder %v397_v53, %v177_v45  ;;  %v192_v50 = vadd.s32 %v191_v47, %v189_v46 }
 0x285   :  { %v298_v49 = vsel %vm238_vm9, 1.0, %v323_v48 }
 0x286   :  { %300 = vmatmul.msk.f32.vlgmr.msra.gmra.mxu2 %vm150_vm10, %v298_v49  ;;  %vm239_vm11 = vcmp.eq.s32.totalorder %v397_v53, %v192_v50 }
 0x287   :  { %v299_v51 = vsel %vm239_vm11, 1.0, %v323_v48 }
 0x28e   :  { %301 = vmatmul.msk.f32.gmra.mxu2 %vm150_vm10, %v299_v51 }
 0x309   :  { %v267_v52 = vpop.f32.mrf.mxu2 }
 0x30a   :  { %276 = vst.msk [vmem:[%s429_s6] sm:$0xff] %vm150_vm10, %v267_v52 }
 0x311   :  { %v270_v54 = vpop.f32.mrf.mxu2 }
 0x312   :  { %277 = vst.msk [vmem:[%s429_s6 + $0x8] sm:$0xff] %vm150_vm10, %v270_v54 }

</bundles_post_ra>
